<compile_context>
chip_gen: v7x
topology: tpu7x:2x2x1
jax: 0.10.0
libtpu: 0.0.40
codegen_flags: <defaults>
</compile_context>

<pallas_src>
import functools

import jax
import jax.numpy as jnp
from jax.experimental import pallas as pl
from jax.experimental.pallas import tpu as pltpu


# ----------------------------------------------------------------------------
# Kernels
# ----------------------------------------------------------------------------

def _cg_mxu_kernel(x_ref, w_ref, b_ref, o_ref):
    """Fused path: full (C, C) weight grid-resident, one MXU matmul per tile."""
    x = x_ref[...]                                        # (C, TL) activation dtype
    w = w_ref[...]                                        # (C, C)  matmul dtype
    lin = jnp.dot(w, x.astype(w.dtype),
                  preferred_element_type=jnp.float32) + b_ref[...]
    gate = jax.nn.sigmoid(lin)                            # EUP transcendental, f32
    # gate stays f32; single downcast at the store (v5e has no bf16 VALUs).
    o_ref[...] = (x.astype(jnp.float32) * gate).astype(o_ref.dtype)


def _cg_vpu_kernel(x_ref, w_ref, b_ref, o_ref, *, c):
    """Tiny-C path: C^2 broadcast FMAs on the VPU instead of a padded MXU op."""
    x = x_ref[...]                                        # (C, TL)
    xf = x.astype(jnp.float32)
    w = w_ref[...].astype(jnp.float32)                    # (C, C), tiny
    lin = b_ref[...]                                      # (C, 1) f32
    for i in range(c):                                    # unrolled at trace time
        lin = lin + w[:, i:i + 1] * xf[i:i + 1, :]        # (C,1)*(1,TL) -> (C,TL)
    gate = jax.nn.sigmoid(lin)
    o_ref[...] = (xf * gate).astype(o_ref.dtype)


def _cg_split_kernel(x_ref, w_ref, b_ref, o_ref, *, to):
    """Large-C path: output channels tiled over grid axis 2; only a (TO, C)
    weight slice is resident while the full-C x tile stays resident across it."""
    oi = pl.program_id(2)
    x = x_ref[...]                                        # (C, TL)
    w = w_ref[...]                                        # (TO, C)
    lin = jnp.dot(w, x.astype(w.dtype),
                  preferred_element_type=jnp.float32) + b_ref[...]
    gate = jax.nn.sigmoid(lin)                            # (TO, TL) f32
    start = pl.multiple_of(oi * to, to)
    xo = x_ref[pl.ds(start, to), :].astype(jnp.float32)   # matching channel rows
    o_ref[...] = (xo * gate).astype(o_ref.dtype)


# ----------------------------------------------------------------------------
# Tiling helpers
# ----------------------------------------------------------------------------

def _vmem_capacity_bytes():
    try:
        return int(pltpu.get_tpu_info().vmem_capacity_bytes)
    except Exception:
        return 64 << 20                       # conservative fallback (v7x physical)


def _round_up(x, m):
    return -(-x // m) * m


def _pick_lane_tile(hw, target_tl, max_tl, other_steps, min_steps=4):
    """Lane tile: multiple of 128 (or full dim when hw < 128), close to
    target_tl, within max_tl, and leaving >= min_steps total grid steps so
    both v7x TensorCores receive work (harmless on 1-TC v5e/v6e)."""
    if hw < 128:
        return hw                             # full-dim block (allowed)
    tl = max(128, min(target_tl, max_tl, hw))
    tl = (tl // 128) * 128
    # Keep the grid at >= min_steps total steps (dual-TC sharding on v7x).
    while tl > 128 and other_steps * pl.cdiv(hw, tl) < min_steps:
        new_tl = max(128, ((tl // 2) // 128) * 128)
        if new_tl == tl:
            break
        tl = new_tl
    # Prefer an exact divisor of hw (no masked edge tile) if it costs < 2x.
    if hw % 128 == 0:
        t = tl
        while t > 128 and hw % t:
            t -= 128
        if hw % t == 0 and 2 * t >= tl:
            tl = t
    return tl


def _pick_channel_tile(c, w_itemsize, budget_bytes, max_to=512):
    """Largest multiple-of-8 divisor of C, capped so the double-buffered
    (TO, C) weight slice stays well inside the budget."""
    cap = min(max_to, max(8, budget_bytes // max(1, 4 * c * w_itemsize)))
    best = None
    t = 8
    while t <= min(c, cap):
        if c % t == 0:
            best = t
        t += 8
    return best


# ----------------------------------------------------------------------------
# Wrapper
# ----------------------------------------------------------------------------

def context_gating(x_nchw, weight, bias, *, target_block_bytes=2 << 20,
                   matmul_in_bf16=None, force_split_channels=None):
    """Fused ContextGating forward.

    x_nchw: (N, C, H, W); weight: (C, C) torch-style (out, in); bias: (C,).
    matmul_in_bf16=None (auto) casts f32 matmul inputs to bf16 when C >= 256
    (compute-bound regime on bf16-native MXUs); pass False for exact f32.
    """
    N, C, H, W = x_nchw.shape
    HW = H * W
    dtype = x_nchw.dtype
    itemsize = jnp.dtype(dtype).itemsize

    # Free reshape: NCHW -> (N, C, H*W).  No transpose, no pad, no HBM pass.
    x3 = x_nchw.reshape(N, C, HW)

    tiny_c = C < (16 if itemsize <= 2 else 8)

    if matmul_in_bf16 is None:
        matmul_in_bf16 = (dtype == jnp.float32) and (C >= 256) and not tiny_c
    w_dtype = jnp.bfloat16 if (matmul_in_bf16 and dtype == jnp.float32) else dtype
    w_itemsize = jnp.dtype(w_dtype).itemsize
    w = weight.astype(w_dtype)
    b2 = bias.astype(jnp.float32).reshape(C, 1)   # f32 bias for the f32 accumulator

    cap = _vmem_capacity_bytes()
    budget = int(cap * 0.7)                       # headroom vs. physical VMEM
    Cp = _round_up(C, 8)                          # sublane-padded channel count
    w_bytes = C * C * w_itemsize
    b_pad_bytes = Cp * 128 * 4                    # (C,1) f32 block, lane-padded

    # Large-C path selection: the double-buffered resident weight must leave at
    # least half the budget for x/out tiles + f32 intermediates.
    to = None
    if force_split_channels is not None and not tiny_c:
        to = int(force_split_channels)
        assert C % to == 0 and (to % 8 == 0 or to == C), "invalid channel tile"
    elif not tiny_c and 2 * w_bytes > budget // 2:
        to = _pick_channel_tile(C, w_itemsize, budget)
        # TODO(synk): if C has no multiple-of-8 divisor we fall back to the
        # resident-weight path and rely on vmem_limit_bytes to flag a misfit.

    if to is None:
        # ---- fused path: whole (C, C) weight resident ------------------------
        per_lane = 4 * Cp * itemsize + 3 * Cp * 4      # x/out (2 bufs each) + f32 temps
        block_budget = max(0, budget - 2 * w_bytes - 2 * b_pad_bytes)
        target_tl = max(128, target_block_bytes // max(1, C * itemsize))
        max_tl = max(128, block_budget // max(1, per_lane))
        tl = _pick_lane_tile(HW, target_tl, max_tl, other_steps=N)
        grid = (N, pl.cdiv(HW, tl))

        kernel = (functools.partial(_cg_vpu_kernel, c=C) if tiny_c
                  else _cg_mxu_kernel)
        in_specs = [
            pl.BlockSpec((None, C, tl), lambda n, j: (n, 0, j)),
            pl.BlockSpec((C, C), lambda n, j: (0, 0)),          # grid-resident
            pl.BlockSpec((C, 1), lambda n, j: (0, 0)),          # grid-resident
        ]
        out_spec = pl.BlockSpec((None, C, tl), lambda n, j: (n, 0, j))
        semantics = ("parallel", "parallel")
        need = (2 * w_bytes + 2 * b_pad_bytes
                + 4 * Cp * tl * itemsize + 3 * Cp * tl * 4)
    else:
        # ---- split-C path: output channels on a 3rd all-parallel grid axis ---
        per_lane = (2 * Cp * itemsize                 # x (2 bufs), full C resident
                    + 2 * to * itemsize               # out (2 bufs)
                    + 3 * to * 4 + Cp * 4)            # f32 lin/gate + upcast slack
        w_block_bytes = 2 * to * C * w_itemsize
        block_budget = max(0, budget - w_block_bytes - 2 * to * 128 * 4)
        target_tl = max(128, target_block_bytes // max(1, C * itemsize))
        max_tl = max(128, block_budget // max(1, per_lane))
        tl = _pick_lane_tile(HW, target_tl, max_tl, other_steps=N * (C // to))
        grid = (N, pl.cdiv(HW, tl), C // to)

        kernel = functools.partial(_cg_split_kernel, to=to)
        in_specs = [
            pl.BlockSpec((None, C, tl), lambda n, j, o: (n, 0, j)),   # resident over o
            pl.BlockSpec((to, C), lambda n, j, o: (o, 0)),
            pl.BlockSpec((to, 1), lambda n, j, o: (o, 0)),
        ]
        out_spec = pl.BlockSpec((None, to, tl), lambda n, j, o: (n, o, j))
        semantics = ("parallel", "parallel", "parallel")
        need = (w_block_bytes + 2 * to * 128 * 4
                + 2 * Cp * tl * itemsize + 2 * to * tl * itemsize
                + 3 * to * tl * 4 + Cp * tl * 4)

    # vmem_limit derived from the real working set (explicit about v7x 64 MiB).
    vmem_limit = min(max(2 * need + (8 << 20), 32 << 20), int(cap * 0.85))

    out3 = pl.pallas_call(
        kernel,
        out_shape=jax.ShapeDtypeStruct((N, C, HW), dtype),
        grid_spec=pltpu.PrefetchScalarGridSpec(
            num_scalar_prefetch=0,
            grid=grid,
            in_specs=in_specs,
            out_specs=out_spec,
        ),
        compiler_params=pltpu.CompilerParams(
            dimension_semantics=semantics,
            vmem_limit_bytes=vmem_limit,
        ),
    )(x3, w, b2)

    return out3.reshape(N, C, H, W)                     # free reshape back to NCHW


# ----------------------------------------------------------------------------
# Reference + self-test
# ----------------------------------------------------------------------------

def _reference(x_nchw, weight, bias):
    xf = x_nchw.astype(jnp.float32)
    x_nhwc = jnp.transpose(xf, (0, 2, 3, 1))
    lin = jnp.einsum('nhwc,oc->nhwo', x_nhwc, weight.astype(jnp.float32))
    lin = lin + bias.astype(jnp.float32)
    lin = jnp.transpose(lin, (0, 3, 1, 2))
    return xf * jax.nn.sigmoid(lin)


if __name__ == "__main__":
    key = jax.random.PRNGKey(0)

    def make_case(k, N, C, H, W, dtype):
        kx, kw, kb = jax.random.split(k, 3)
        x = jax.random.normal(kx, (N, C, H, W), dtype=jnp.float32).astype(dtype)
        bound = 1.0 / (C ** 0.5)
        weight = jax.random.uniform(kw, (C, C), minval=-bound, maxval=bound,
                                    dtype=jnp.float32)
        bias = jax.random.uniform(kb, (C,), minval=-bound, maxval=bound,
                                  dtype=jnp.float32)
        return x, weight, bias

    cases = [
        # name,            N, C,  H,  W,  dtype,        atol, rtol, extra kwargs
        ("tiny_c_vpu",     2, 4,  16, 16, jnp.float32,  1e-5, 1e-5, {}),
        ("mxu_edge_tile",  2, 32, 12, 12, jnp.float32,  1e-4, 1e-5, {}),
        ("split_channels", 1, 32, 16, 16, jnp.float32,  1e-4, 1e-5,
         {"force_split_channels": 8}),
        ("bf16_mxu",       2, 16, 16, 16, jnp.bfloat16, 3e-2, 3e-2, {}),
    ]

    subkeys = jax.random.split(key, len(cases))
    for sk, (name, N, C, H, W, dtype, atol, rtol, kw) in zip(subkeys, cases):
        x, weight, bias = make_case(sk, N, C, H, W, dtype)
        out = jax.block_until_ready(context_gating(x, weight, bias, **kw))
        ref = _reference(x, weight, bias)
        assert out.shape == (N, C, H, W), name
        assert out.dtype == dtype, name
        assert jnp.allclose(out.astype(jnp.float32), ref, atol=atol, rtol=rtol), (
            f"{name}: mismatch vs reference")

    print("KERNEL_OK")
</pallas_src>

<mosaic_0001>
module attributes {stable_mosaic.version = 11 : i64} {
  func.func @_cg_vpu_kernel(%arg0: i32, %arg1: i32, %arg2: memref<1x4x128xf32, #tpu.memory_space<vmem>>, %arg3: memref<4x4xf32, #tpu.memory_space<vmem>>, %arg4: memref<4x1xf32, #tpu.memory_space<vmem>>, %arg5: memref<1x4x128xf32, #tpu.memory_space<vmem>>) attributes {dimension_semantics = [#tpu.dimension_semantics<parallel>, #tpu.dimension_semantics<parallel>], iteration_bounds = array<i64: 2, 2>, scalar_prefetch = 0 : i64, scratch_operands = 0 : i64, tpu.core_type = #tpu.core_type<tc>, window_params = [{transform_indices = @transform_0, window_bounds = array<i64: 1, 4, 128>}, {pipeline_mode = #tpu.pipeline_mode<synchronous>, transform_indices = @transform_1, window_bounds = array<i64: 4, 4>}, {pipeline_mode = #tpu.pipeline_mode<synchronous>, transform_indices = @transform_2, window_bounds = array<i64: 4, 1>}, {transform_indices = @transform_3, window_bounds = array<i64: 1, 4, 128>}]} {
    %c0 = arith.constant 0 : index
    %c0_0 = arith.constant 0 : index
    %c0_1 = arith.constant 0 : index
    %0 = vector.load %arg2[%c0, %c0_0, %c0_1] : memref<1x4x128xf32, #tpu.memory_space<vmem>>, vector<1x4x128xf32>
    %1 = vector.shape_cast %0 : vector<1x4x128xf32> to vector<4x128xf32>
    %c0_2 = arith.constant 0 : index
    %c0_3 = arith.constant 0 : index
    %2 = vector.load %arg3[%c0_2, %c0_3] : memref<4x4xf32, #tpu.memory_space<vmem>>, vector<4x4xf32>
    %c0_4 = arith.constant 0 : index
    %c0_5 = arith.constant 0 : index
    %3 = vector.load %arg4[%c0_4, %c0_5] : memref<4x1xf32, #tpu.memory_space<vmem>>, vector<4x1xf32>
    %4 = vector.extract_strided_slice %2 {offsets = [0, 0], sizes = [4, 1], strides = [1, 1]} : vector<4x4xf32> to vector<4x1xf32>
    %5 = vector.extract_strided_slice %1 {offsets = [0, 0], sizes = [1, 128], strides = [1, 1]} : vector<4x128xf32> to vector<1x128xf32>
    %6 = vector.broadcast %4 : vector<4x1xf32> to vector<4x128xf32>
    %7 = vector.broadcast %5 : vector<1x128xf32> to vector<4x128xf32>
    %8 = arith.mulf %6, %7 : vector<4x128xf32>
    %9 = vector.broadcast %3 : vector<4x1xf32> to vector<4x128xf32>
    %10 = arith.addf %9, %8 : vector<4x128xf32>
    %11 = vector.extract_strided_slice %2 {offsets = [0, 1], sizes = [4, 1], strides = [1, 1]} : vector<4x4xf32> to vector<4x1xf32>
    %12 = vector.extract_strided_slice %1 {offsets = [1, 0], sizes = [1, 128], strides = [1, 1]} : vector<4x128xf32> to vector<1x128xf32>
    %13 = vector.broadcast %11 : vector<4x1xf32> to vector<4x128xf32>
    %14 = vector.broadcast %12 : vector<1x128xf32> to vector<4x128xf32>
    %15 = arith.mulf %13, %14 : vector<4x128xf32>
    %16 = arith.addf %10, %15 : vector<4x128xf32>
    %17 = vector.extract_strided_slice %2 {offsets = [0, 2], sizes = [4, 1], strides = [1, 1]} : vector<4x4xf32> to vector<4x1xf32>
    %18 = vector.extract_strided_slice %1 {offsets = [2, 0], sizes = [1, 128], strides = [1, 1]} : vector<4x128xf32> to vector<1x128xf32>
    %19 = vector.broadcast %17 : vector<4x1xf32> to vector<4x128xf32>
    %20 = vector.broadcast %18 : vector<1x128xf32> to vector<4x128xf32>
    %21 = arith.mulf %19, %20 : vector<4x128xf32>
    %22 = arith.addf %16, %21 : vector<4x128xf32>
    %23 = vector.extract_strided_slice %2 {offsets = [0, 3], sizes = [4, 1], strides = [1, 1]} : vector<4x4xf32> to vector<4x1xf32>
    %24 = vector.extract_strided_slice %1 {offsets = [3, 0], sizes = [1, 128], strides = [1, 1]} : vector<4x128xf32> to vector<1x128xf32>
    %25 = vector.broadcast %23 : vector<4x1xf32> to vector<4x128xf32>
    %26 = vector.broadcast %24 : vector<1x128xf32> to vector<4x128xf32>
    %27 = arith.mulf %25, %26 : vector<4x128xf32>
    %28 = arith.addf %22, %27 : vector<4x128xf32>
    %29 = arith.negf %28 : vector<4x128xf32>
    %30 = math.exp %29 : vector<4x128xf32>
    %cst = arith.constant 1.000000e+00 : f32
    %31 = vector.broadcast %cst : f32 to vector<4x128xf32>
    %32 = arith.addf %31, %30 : vector<4x128xf32>
    %33 = arith.divf %31, %32 : vector<4x128xf32>
    %34 = arith.mulf %1, %33 : vector<4x128xf32>
    %c0_6 = arith.constant 0 : index
    %c0_7 = arith.constant 0 : index
    %c0_8 = arith.constant 0 : index
    %35 = vector.load %arg5[%c0_6, %c0_7, %c0_8] : memref<1x4x128xf32, #tpu.memory_space<vmem>>, vector<1x4x128xf32>
    %36 = vector.shape_cast %35 : vector<1x4x128xf32> to vector<4x128xf32>
    %37 = vector.shape_cast %34 : vector<4x128xf32> to vector<1x4x128xf32>
    tpu.vector_store %arg5[%c0_6, %c0_7, %c0_8], %37 {strides = array<i32>} : memref<1x4x128xf32, #tpu.memory_space<vmem>>, vector<1x4x128xf32>,
    return
  }
  func.func @transform_0(%arg0: i32, %arg1: i32) -> (i32, i32, i32) {
    %c0_i32 = arith.constant 0 : i32
    %c0_i32_0 = arith.constant 0 : i32
    return %arg0, %c0_i32, %arg1 : i32, i32, i32
  }
  func.func @transform_1(%arg0: i32, %arg1: i32) -> (i32, i32) {
    %c0_i32 = arith.constant 0 : i32
    %c0_i32_0 = arith.constant 0 : i32
    %c0_i32_1 = arith.constant 0 : i32
    return %c0_i32, %c0_i32_0 : i32, i32
  }
  func.func @transform_2(%arg0: i32, %arg1: i32) -> (i32, i32) {
    %c0_i32 = arith.constant 0 : i32
    %c0_i32_0 = arith.constant 0 : i32
    %c0_i32_1 = arith.constant 0 : i32
    return %c0_i32, %c0_i32_0 : i32, i32
  }
  func.func @transform_3(%arg0: i32, %arg1: i32) -> (i32, i32, i32) {
    %c0_i32 = arith.constant 0 : i32
    %c0_i32_0 = arith.constant 0 : i32
    return %arg0, %c0_i32, %arg1 : i32, i32, i32
  }
}

</mosaic_0001>

<bundles_post_ra>
// kernel: tpu_custom_call.1
= control target key start
LH: loop header
LB: loop body
LE: loop exit
PB: predicated region body
PF: predicated region fallthrough
CT: control target
= control target key end

     0   :  { %8 = vsyncpa [#allocation3], 0  ;;  %s828_s0 = inlined_call_operand.hbm [shape: f32[2,4,256], index: 0, kind: input, shape index: {}]   ;;  %s829_s1 = inlined_call_operand.vmem [shape: f32[4,4], index: 1, kind: input, shape index: {}]   ;;  %s830_s2 = inlined_call_operand.vmem [shape: f32[4,1], index: 2, kind: input, shape index: {}]   ;;  %s831_s3 = inlined_call_operand.hbm [shape: f32[2,4,256], index: 3, kind: output, shape index: {}]  }
   0x1   :  { %10 = vsyncpa [#allocation3 + $0x1], 0 }
   0x2   :  { %11 = vsyncpa [#allocation4], 0 }
   0x3   :  { %13 = vsyncpa [#allocation4 + $0x1], 0  ;;  %s624_s12 = smov 0   ;;  %s626_s13 = smov 0  }
   0x4   :  { %s628_s14 = smov 0   ;;  %s630_s15 = smov 0  }
   0x5   :  { %s632_s16 = smov 0   ;;  %s634_s17 = smov 0  }
   0x6   :  { %s636_s18 = smov 0   ;;  %s638_s19 = smov 0  }
   0x7 LB: > { %s362_s20 = sadd.s32 4294967295, %s596_s19   ;;  %s363_s21 = sadd.s32 4294967294, %s596_s19   ;;  %s596_s19 = sphi %s638_s19, %s19_s19   ;;  %s592_s18 = sphi %s636_s18, %s848_s18   ;;  %s588_s17 = sphi %s634_s17, %s847_s17   ;;  %s584_s16 = sphi %s632_s16, %s846_s16   ;;  %s580_s15 = sphi %s630_s15, %s845_s15   ;;  %s576_s14 = sphi %s628_s14, %s844_s14   ;;  %s572_s13 = sphi %s626_s13, %s843_s13   ;;  %s568_s12 = sphi %s624_s12, %s842_s12  }
   0x8   : > { %s28_s22 = sadd.s32 1, %s588_s17  ;;  %s31_s23 = sadd.s32 1, %s592_s18 }
   0x9   : > { %p29_p0 = scmp.ge.s32.totalorder %s28_s22, 2  ;;  %s40_s24 = sadd.s32 1, %s576_s14 }
   0xa   : > { %p47_p1 = scmp.ne.s32.totalorder %s576_s14, %s572_s13  ;;  %p48_p2 = scmp.eq.s32.totalorder %s596_s19, 0 }
   0xb   : > { %s850_s22 = smov (%p29_p0, %s28_s22), 0  ;;  %s852_s23 = smov (!%p29_p0, %s31_s23), %s592_s18 }
   0xc   : > { %s36_s25 = ssub.s32 %s588_s17, %s850_s22  ;;  %p677_p3 = por %p48_p2, %p47_p1 }
   0xd   : > { %p33_p4 = scmp.ge.s32.totalorder %s852_s23, 2  ;;  %p53_p5 = scmp.ne.s32.totalorder %s572_s13, %s568_s12 }
   0xe   : > { %p54_p6 = scmp.eq.s32.totalorder %s362_s20, 0  ;;  %p121_p7 = scmp.eq.s32.totalorder %s362_s20, 3 }
   0xf   : > { %s854_s23 = smov (%p33_p4, %s852_s23), 0  ;;  %p127_p10 = scmp.eq.s32.totalorder %s363_s21, 3 }
  0x10   : > { %p685_p8 = por %p54_p6, %p53_p5  ;;  %p689_p9 = por %p121_p7, %p47_p1 }
  0x11   : > { %s35_s29 = ssub.s32 %s592_s18, %s854_s23  ;;  %p695_p12 = por %p127_p10, %p53_p5 }
  0x12   : > { %s835_s28 = scalar_select %p689_p9, 1, 0 }
  0x13   : > { %s37_s30 = sor.u32 %s36_s25, %s35_s29  ;;  %p390_p13 = scmp.lt.s32.totalorder %s596_s19, 4 }
  0x14   : > { %p38_p11 = scmp.eq.s32.totalorder %s37_s30, 0  ;;  %s153_s5 = sand.u32 1, %s576_s14  }
  0x15   : > { %s836_s4 = scalar_select %p695_p12, 1, 0 }
  0x16   : > { %s702_s6 = scalar_select %p38_p11, %s576_s14, %s40_s24  }
  0x17   : > { %s366_s7 = sshll.u32 %s153_s5, 2  ;;  %s367_s8 = sshll.u32 %s592_s18, 1 }
  0x18   : > { %s162_s9 = sadd.s32 %s588_s17, %s367_s8  ;;  %s157_s10 = scalar_lea.vmem [#allocation2], %s366_s7 }
  0x19   : > { %s166_s11 = sshll.u32 %s157_s10, 4  ;;  %s368_s20 = sshll.u32 %s162_s9, 6  ;;  %s706_s11 = int_to_ptr.vmem [resolvable:$true] %s166_s11 }
  0x1a   : > { %s711_s29 = scalar_lea.hbm %s828_s0, %s368_s20  ;;  %p715_p0 = pnand %p390_p13, %p677_p3 }
  0x1b   : > { %s154_s30 = scalar_lea.sflag [#allocation3], %s153_s5  ;;  %s468_s7 = scalar_lea.hbm %s711_s29, 64 }
  0x1c   : > { %p469_p4 = scmp.ne.s32.totalorder %s711_s29, %s468_s7  ;;  %p470_p5 = pneg %p715_p0 }
  0x1d   : > { %s473_s9 = scalar_lea.hbm %s828_s0, 256  ;;  %p474_p3 = scmp.lt.u32.totalorder %s711_s29, %s828_s0 }
  0x1e   : > { %p471_p6 = pnand %p470_p5, %p469_p4  ;;  %p475_p10 = scmp.lt.u32.totalorder %s473_s9, %s468_s7 }
  0x1f   : > { %p477_p13 = scmp.lt.u32.totalorder %s468_s7, %s711_s29 }
  0x20   : > { %p472_p7 = pneg %p471_p6  ;;  %p476_p11 = por %p475_p10, %p474_p3 }
  0x22   : > { %p478_p1 = por %p477_p13, %p476_p11 }
  0x24   : > { %p479_p2 = pnand %p478_p1, %p472_p7 }
  0x26   : > { %482 = shalt.err (!%p479_p2)
}
  0x27   : > { %s483_s5 = scalar_lea.vmem %s706_s11, 64  ;;  %s598_s21 = smov [#allocation2]  }
  0x28   : > { %p484_p4 = scmp.ne.s32.totalorder %s706_s11, %s483_s5  ;;  %s488_s25 = sshll.u32 %s598_s21, 4  ;;  %s489_s25 = int_to_ptr.vmem [resolvable:$false] %s488_s25 }
  0x29   : > { %s490_s26 = scalar_lea.vmem %s489_s25, 128  ;;  %p491_p9 = scmp.lt.s32.totalorder %s706_s11, %s489_s25 }
  0x2a   : > { %p486_p6 = pnand %p484_p4, %p470_p5  ;;  %p492_p3 = scmp.lt.s32.totalorder %s490_s26, %s483_s5 }
  0x2c   : > { %p487_p12 = pneg %p486_p6  ;;  %p493_p10 = por %p492_p3, %p491_p9 }
  0x2e   : > { %p494_p11 = pnand %p493_p10, %p487_p12 }
  0x30   : > { %497 = shalt.err (!%p494_p11)
}
  0x31   : > { %385 = dma.hbm_to_vmem [thread:$0]  (!%p715_p0), %s711_s29, 64, %s706_s11, %s154_s30  }
  0x32   : > { %p838_p1 = scmp.lt.s32.totalorder %s596_s19, 5  ;;  %p839_p2 = scmp.ge.s32.totalorder %s596_s19, 1 }
  0x34   : > { %p172_p5 = pnand %p839_p2, %p838_p1 }
  0x35   : > { %s751_s7 = sand.u32 (!%p172_p5), 1, %s572_s13  }
  0x36   : > { %175 = sbr.rel (%p172_p5) target bundleno = 247 (0xf7), region = 32  ;;  %s370_s8 = sshll.u32 (!%p172_p5), %s751_s7, 2 }
  0x37   : > { %s178_s9 = scalar_lea.sflag (!%p172_p5), [#allocation3], %s751_s7  ;;  %s181_s24 = scalar_lea.vmem (!%p172_p5), [#allocation2], %s370_s8 }
  0x3d   : > { %559 = dma.done.wait (%p685_p8), %s178_s9, 64  }
  0x3e   : > { %561 = vsyncadd (%p685_p8), %s178_s9, 4294967232  ;;  %v599_v0 = vmov 0   ;;  %v600_v1 = vmov 1   ;;  %v205_v2 = vld [vmem:[%s829_s1] sm:$0xf]  ;;  %v601_v4 = vmov 2   ;;  %v212_v6 = vlaneseq }
  0x3f   : > { %460 = vset.pattern.permute.xlu0 %v599_v0  ;;  %461 = vset.pattern.permute.xlu1 %v600_v1  ;;  %v206_v3 = vld [vmem:[%s830_s2] sm:$0xf]  ;;  %v602_v5 = vmov 3   ;;  %s374_s27 = sshll.u32 %s584_s16, 1  ;;  %s203_s21 = scalar_lea.vmem [#allocation5], %s370_s8 }
  0x40   : > { %209 = vperm.xlu0 %460, %v205_v2   ;;  %224 = vperm.xlu1 %461, %v205_v2   ;;  %v213_v7 = vshrl.u32 %v212_v6, 7  ;;  %v204_v9 = vld [vmem:[%s181_s24] sm:$0xf]  ;;  %s273_s20 = sadd.s32 %s580_s15, %s374_s27  ;;  %s277_s25 = sshll.u32 %s203_s21, 4  ;;  %s776_s25 = int_to_ptr.vmem [resolvable:$true] %s277_s25 }
  0x41   : > { %s375_s5 = sshll.u32 %s273_s20, 6  ;;  %s262_s11 = scalar_lea.sflag [#allocation4], %s751_s7 }
  0x42   : > { %v214_v8 = vsub.s32 0, %v213_v7  ;;  %v229_v10 = vsub.s32 1, %v213_v7  ;;  %v239_v11 = vsub.s32 2, %v213_v7  ;;  %v249_v17 = vsub.s32 3, %v213_v7  ;;  %s774_s24 = scalar_lea.hbm %s831_s3, %s375_s5  ;;  %s498_s16 = scalar_lea.vmem %s776_s25, 64 }
  0x43   : > { %p499_p8 = scmp.ne.s32.totalorder %s776_s25, %s498_s16  ;;  %p840_p9 = scmp.ne.s32.totalorder %s835_s28, 0 }
  0x44   : > { %219 = vperm.xlu0 %460, %v206_v3   ;;  %462 = vset.pattern.permute.xlu1 %v601_v4  ;;  %v215_v12 = vrot.slane %v204_v9, %v214_v8  ;;  %v230_v15 = vrot.slane %v204_v9, %v229_v10  ;;  %v240_v16 = vrot.slane %v204_v9, %v239_v11  ;;  %s603_s15 = smov [#allocation5]  }
  0x45   : > { %234 = vperm.xlu1 %462, %v205_v2   ;;  %v250_v24 = vrot.slane %v204_v9, %v249_v17  ;;  %p500_p12 = pnand %p499_p8, %p840_p9  ;;  %s502_s8 = sshll.u32 %s603_s15, 4  ;;  %s503_s8 = int_to_ptr.vmem [resolvable:$false] %s502_s8 }
  0x46   : > { %s504_s29 = scalar_lea.vmem %s503_s8, 128  ;;  %p505_p7 = scmp.lt.s32.totalorder %s776_s25, %s503_s8 }
  0x47   : > { %p501_p0 = pneg %p500_p12  ;;  %p506_p13 = scmp.lt.s32.totalorder %s504_s29, %s498_s16 }
  0x48   : > { %463 = vset.pattern.permute.xlu0 %v602_v5 }
  0x49   : > { %244 = vperm.xlu0 %463, %v205_v2   ;;  %p507_p4 = por %p506_p13, %p505_p7 }
  0x4b   : > { %p508_p6 = pnand %p507_p4, %p501_p0 }
  0xbf   : > { %v210_v13 = vpop.permute.xlu0 %209  ;;  %v225_v14 = vpop.permute.xlu1 %224 }
  0xc0   : > { %v216_v18 = vmul.f32 %v215_v12, %v210_v13  ;;  %v231_v20 = vmul.f32 %v230_v15, %v225_v14 }
  0xc3   : > { %v220_v19 = vpop.permute.xlu0 %219 }
  0xc4   : > { %v222_v21 = vadd.f32 %v220_v19, %v216_v18  ;;  %v235_v22 = vpop.permute.xlu1 %234 }
  0xc5   : > { %v241_v23 = vmul.f32 %v240_v16, %v235_v22 }
  0xc6   : > { %v232_v25 = vadd.f32 %v231_v20, %v222_v21 }
  0xc8   : > { %v242_v26 = vadd.f32 %v241_v23, %v232_v25  ;;  %v245_v27 = vpop.permute.xlu0 %244 }
  0xc9   : > { %v251_v28 = vmul.f32 %v250_v24, %v245_v27 }
  0xcb   : > { %v252_v29 = vadd.f32 %v251_v28, %v242_v26 }
  0xcd   : > { %v372_v30 = vmul.f32 -1.442695, %v252_v29 }
  0xcf   : > { %464 = vpow2.f32 %v372_v30 }
  0xd9   : > { %v465_v31 = vpop.eup %464 }
  0xda   : > { %v256_v32 = vadd.f32 1.0, %v465_v31 }
  0xdc   : > { %466 = vrcp.f32 %v256_v32 }
  0xe6   : > { %v467_v33 = vpop.eup %466 }
  0xe7   : > { %v259_v34 = vmul.f32 %v467_v33, %v204_v9 }
  0xe9   : > { %260 = vst [vmem:[%s203_s21] sm:$0xf] %v259_v34 }
  0xea   : > { %511 = shalt.err (!%p508_p6)
}
  0xeb   : > { %s512_s7 = scalar_lea.hbm %s774_s24, 64  ;;  %s516_s27 = scalar_lea.hbm %s831_s3, 256 }
  0xec   : > { %p513_p3 = scmp.ne.s32.totalorder %s774_s24, %s512_s7  ;;  %p517_p1 = scmp.lt.u32.totalorder %s774_s24, %s831_s3 }
  0xed   : > { %p518_p2 = scmp.lt.u32.totalorder %s516_s27, %s512_s7  ;;  %p520_p8 = scmp.lt.u32.totalorder %s512_s7, %s774_s24 }
  0xee   : > { %p514_p10 = pnand %p513_p3, %p840_p9 }
  0xef   : > { %p519_p5 = por %p518_p2, %p517_p1 }
  0xf0   : > { %p515_p11 = pneg %p514_p10 }
  0xf1   : > { %p521_p12 = por %p520_p8, %p519_p5 }
  0xf3   : > { %p522_p0 = pnand %p521_p12, %p515_p11 }
  0xf5   : > { %525 = shalt.err (!%p522_p0)
}
  0xf6   : > { %380 = dma.vmem_to_hbm [thread:$0]  (%p840_p9), %s776_s25, 64, %s774_s24, %s262_s11  }
  0xf7 PF: > { %p391_p7 = scmp.ge.s32.totalorder %s596_s19, 2  ;;  %s289_s21 = sand.u32 1, %s568_s12  }
  0xf8   : > { %p841_p13 = scmp.ne.s32.totalorder %s836_s4, 0  ;;  %s290_s26 = scalar_lea.sflag [#allocation4], %s289_s21 }
  0xfa   : > { %p387_p4 = pnand %p391_p7, %p841_p13 }
  0xfc   : > { %563 = dma.done.wait (!%p387_p4), %s290_s26, 64  }
  0xfd   : > { %565 = vsyncadd (!%p387_p4), %s290_s26, 4294967232  ;;  %s19_s19 = sadd.s32 1, %s596_s19   ;;  %s842_s12 = smov %s572_s13 }
  0xfe   : > { %p16_p6 = scmp.ge.s32.totalorder %s19_s19, 6   ;;  %s843_s13 = smov %s576_s14 }
  0xff   : > { %s844_s14 = smov %s702_s6  ;;  %s845_s15 = smov %s588_s17 }
 0x100   : > { %s846_s16 = smov %s592_s18  ;;  %s847_s17 = smov %s850_s22 }
 0x101   : > { %s848_s18 = smov %s854_s23  ;;  %18 = sbr.rel (!%p16_p6) target bundleno = 7 (0x7), region = 77 }
 0x108   :  { %295 = vsyncpa [#allocation3], 1 }
 0x109   :  { %297 = vsyncpa [#allocation3 + $0x1], 1 }
 0x10a   :  { %298 = vsyncpa [#allocation4], 1 }
 0x10b   :  { %300 = vsyncpa [#allocation4 + $0x1], 1 }

</bundles_post_ra>
